<compile_context>
chip_gen: v7x
topology: tpu7x:2x2x1
jax: 0.10.0
libtpu: 0.0.40
codegen_flags: <defaults>
</compile_context>

<pallas_src>
import functools

import jax
import jax.numpy as jnp
from jax import lax
from jax.experimental import pallas as pl
from jax.experimental.pallas import tpu as pltpu

LARGE = 1000000000.0


# --------------------------------------------------------------------------- #
# Pre-pass: normalize + target logits                                          #
# --------------------------------------------------------------------------- #
def _normalize_pair_kernel(z1_ref, z2_ref, zn_ref, tl_ref, *, inv_tau):
    """Normalize matching tiles of z1/z2 into zn[2, t, d]; emit target logits.

    tl[i] = (norm(z1[i]) . norm(z2[i])) / tau  -- shared by rows i and i+N.
    """
    z1 = z1_ref[...].astype(jnp.float32)
    z2 = z2_ref[...].astype(jnp.float32)
    # NOTE: zero-norm rows produce inf/nan, matching the PyTorch reference.
    n1 = z1 * lax.rsqrt(jnp.sum(z1 * z1, axis=1, keepdims=True))
    n2 = z2 * lax.rsqrt(jnp.sum(z2 * z2, axis=1, keepdims=True))
    zn_ref[0, :, :] = n1.astype(zn_ref.dtype)
    zn_ref[1, :, :] = n2.astype(zn_ref.dtype)
    tl_ref[...] = jnp.sum(n1 * n2, axis=1, keepdims=True) * inv_tau


# --------------------------------------------------------------------------- #
# Main pass: flash-style softmax cross-entropy over the 2N x 2N similarities   #
# --------------------------------------------------------------------------- #
def _simclr_row_kernel(zr_ref, tl_ref, zc_ref, loss_ref, esum_ref, *,
                       inv_tau, col_chunk, unroll):
    """One (row_tile, column_super_block) grid step.

    zr_ref:   [t, d]       row tile of normalized z (bf16 or f32)
    tl_ref:   [t, 1]       per-row target logit (already / tau)
    zc_ref:   [C, d]       VMEM-resident column super-block (C == 2N when it fits)
    loss_ref: [t, 1]       per-row (lse - target), written on the last column step
    esum_ref: [t, 1] f32   running sum of exp(sim/tau - 1/tau)
    """
    ri = pl.program_id(0)
    ci = pl.program_id(1)
    n_co = pl.num_programs(1)
    t = zr_ref.shape[0]
    c_super = zc_ref.shape[0]

    @pl.when(ci == 0)
    def _init():
        esum_ref[...] = jnp.zeros_like(esum_ref)

    # Fold 1/tau into the row operand once (t*d mults) instead of per (t, 2N)
    # similarity element; keep the MXU operands in the stored (bf16) dtype.
    zr_s = (zr_ref[...].astype(jnp.float32) * inv_tau).astype(zc_ref.dtype)

    row0 = ri * t
    cbase = ci * c_super

    def chunk_body(j, acc):
        col0 = pl.multiple_of(j * col_chunk, col_chunk)
        zc = zc_ref[pl.ds(col0, col_chunk), :]
        # (t, col_chunk) similarity tile on the MXU; contract last dims of both
        # operands so no transposed copy of the column chunk is ever built.
        s = lax.dot_general(
            zr_s, zc,
            dimension_numbers=(((1,), (1,)), ((), ())),
            preferred_element_type=jnp.float32,
        )
        # Mask the global diagonal exactly like the reference (sim - LARGE).
        rg = row0 + lax.broadcasted_iota(jnp.int32, s.shape, 0)
        cg = cbase + col0 + lax.broadcasted_iota(jnp.int32, s.shape, 1)
        s = jnp.where(rg == cg, s - LARGE, s)
        # Unit-norm rows => s <= 1/tau (+ tiny bf16 slack): constant-shift softmax.
        # The masked diagonal underflows to exactly 0 in exp, as intended.
        e = jnp.exp(s - inv_tau)
        return acc + jnp.sum(e, axis=1, keepdims=True)

    acc = lax.fori_loop(0, c_super // col_chunk, chunk_body,
                        jnp.zeros((t, 1), jnp.float32), unroll=unroll)
    esum_ref[...] += acc

    @pl.when(ci == n_co - 1)
    def _finalize():
        # lse_i = 1/tau + log(sum_j exp(s_ij - 1/tau));  loss_i = lse_i - target_i
        loss_ref[...] = (inv_tau + jnp.log(esum_ref[...])) - tl_ref[...]


# --------------------------------------------------------------------------- #
# Wrapper                                                                      #
# --------------------------------------------------------------------------- #
def _pick_tile(n, candidates=(256, 128, 64, 32, 16, 8)):
    for t in candidates:
        if n % t == 0:
            return t
    raise ValueError(
        f"simclr_loss: size must be a multiple of 8 (got {n}); padding TODO")


def simclr_loss(z1, z2, tau, *, zn_dtype=jnp.bfloat16):
    """z1, z2: [N, d] embeddings of the same images under two augmentations."""
    n, d = z1.shape
    assert z2.shape == (n, d), (z1.shape, z2.shape)
    t = _pick_tile(n)                       # row tile of the 2N x 2N problem
    n2 = 2 * n
    nb_r = n2 // t                          # number of row tiles
    nb_half = n // t                        # block offset between row & its pair
    inv_tau = float(1.0 / tau)
    elt = jnp.dtype(zn_dtype).itemsize
    in_elt = jnp.dtype(z1.dtype).itemsize

    # Generation-aware VMEM budget (v7x has 64 MiB/TC vs 128 MiB on v5e/v6e).
    try:
        vmem_cap = int(pltpu.get_tpu_info().vmem_capacity_bytes)
    except Exception:  # conservative fallback: v7x per-TC size
        vmem_cap = 64 * 1024 * 1024
    vmem_budget = max(int(0.65 * vmem_cap), 24 * 1024 * 1024)

    # ---- pre-pass: normalize + per-pair target logits --------------------------
    pre_need = (2 * (2 * t * d * in_elt)       # z1/z2 double-buffered tiles
                + 2 * (2 * t * d * elt)        # zn (2, t, d) double-buffered
                + 4 * t * 128 * 4              # tl blocks (lane-padded)
                + 4 * t * d * 4                # f32 temporaries
                + (2 << 20))
    zn3, tl = pl.pallas_call(
        functools.partial(_normalize_pair_kernel, inv_tau=inv_tau),
        out_shape=(jax.ShapeDtypeStruct((2, n, d), zn_dtype),
                   jax.ShapeDtypeStruct((n, 1), jnp.float32)),
        grid_spec=pltpu.PrefetchScalarGridSpec(
            num_scalar_prefetch=0,
            grid=(nb_half,),
            in_specs=[
                pl.BlockSpec((t, d), lambda i: (i, 0)),
                pl.BlockSpec((t, d), lambda i: (i, 0)),
            ],
            out_specs=[
                pl.BlockSpec((2, t, d), lambda i: (0, i, 0)),
                pl.BlockSpec((t, 1), lambda i: (i, 0)),
            ],
        ),
        compiler_params=pltpu.CompilerParams(
            dimension_semantics=("parallel",),
            vmem_limit_bytes=int(max(pre_need, 16 * 1024 * 1024)),
        ),
    )(z1, z2)
    zn = zn3.reshape(n2, d)   # free reshape: rows are [norm(z1); norm(z2)]

    # ---- main pass: choose column chunking so zn stays VMEM-resident -----------
    tc = _pick_tile(n2, (512, 256, 128, 64, 32, 16, 8))   # inner MXU column chunk

    def main_vmem_need(c_sup):
        big = 2 * t * d * elt + 2 * c_sup * d * elt        # double-buffered streams
        small = 5 * t * 128 * 4                            # tl/loss buffers + esum
        interm = t * d * 4 + 2 * t * tc * 4                # zr_s + s + e temporaries
        return big + small + interm + (2 << 20)            # + compiler headroom

    # Largest column super-block (multiple of tc, dividing 2N) fitting the budget;
    # when it equals 2N the column grid axis collapses to a single resident block.
    k_max = n2 // tc
    c_super = tc
    for k in range(k_max, 0, -1):
        if k_max % k == 0 and main_vmem_need(k * tc) <= vmem_budget:
            c_super = k * tc
            break
    nb_co = n2 // c_super
    num_chunks = c_super // tc
    vmem_limit = int(max(main_vmem_need(c_super), 16 * 1024 * 1024))

    kernel = functools.partial(
        _simclr_row_kernel,
        inv_tau=inv_tau,
        col_chunk=tc,
        unroll=num_chunks <= 8,
    )

    per_row = pl.pallas_call(
        kernel,
        out_shape=jax.ShapeDtypeStruct((n2, 1), jnp.float32),
        grid_spec=pltpu.PrefetchScalarGridSpec(
            num_scalar_prefetch=0,
            grid=(nb_r, nb_co),
            in_specs=[
                pl.BlockSpec((t, d), lambda ri, ci: (ri, 0)),              # row tile
                pl.BlockSpec((t, 1), lambda ri, ci: (ri % nb_half, 0)),    # target
                pl.BlockSpec((c_super, d), lambda ri, ci: (ci, 0)),        # columns
            ],
            out_specs=pl.BlockSpec((t, 1), lambda ri, ci: (ri, 0)),
            scratch_shapes=[pltpu.VMEM((t, 1), jnp.float32)],              # esum
        ),
        compiler_params=pltpu.CompilerParams(
            dimension_semantics=("parallel", "arbitrary"),
            vmem_limit_bytes=vmem_limit,
        ),
    )(zn, tl, zn)

    # CrossEntropyLoss(mean): tiny final reduce over 2N scalars stays in JAX.
    return jnp.sum(per_row) / n2


# --------------------------------------------------------------------------- #
# Pure-JAX reference mirroring the PyTorch module                              #
# --------------------------------------------------------------------------- #
def simclr_loss_ref(z1, z2, tau):
    z = jnp.concatenate([z1, z2], axis=0).astype(jnp.float32)
    n2 = z.shape[0]
    n = n2 // 2
    zn = z / jnp.linalg.norm(z, axis=1, keepdims=True)
    sim = (zn @ zn.T) / tau
    sim = sim - LARGE * jnp.eye(n2, dtype=jnp.float32)
    labels = jnp.concatenate([jnp.arange(n, n2), jnp.arange(0, n)])
    log_probs = jax.nn.log_softmax(sim, axis=1)
    return -jnp.mean(log_probs[jnp.arange(n2), labels])


if __name__ == "__main__":
    # Small shapes consistent with the forward: z1, z2 of shape [N, d].
    N, d = 64, 128
    tau = 0.5

    key = jax.random.PRNGKey(0)
    k1, k2 = jax.random.split(key)
    z1 = jax.random.normal(k1, (N, d), dtype=jnp.float32)
    z2 = jax.random.normal(k2, (N, d), dtype=jnp.float32)

    ref = simclr_loss_ref(z1, z2, tau)

    # f32 storage path: tight tolerance.
    loss_f32 = simclr_loss(z1, z2, tau, zn_dtype=jnp.float32)
    jax.block_until_ready(loss_f32)
    assert jnp.allclose(loss_f32, ref, rtol=1e-4, atol=1e-4), (loss_f32, ref)

    # Default bf16-operand path (MXU-native on v5e/v6e/v7x): looser tolerance.
    loss = simclr_loss(z1, z2, tau)
    jax.block_until_ready(loss)
    assert jnp.allclose(loss, ref, rtol=1e-2, atol=3e-2), (loss, ref)

    print("KERNEL_OK")
</pallas_src>

<mosaic_0001>
module attributes {stable_mosaic.version = 11 : i64} {
  func.func @_normalize_pair_kernel(%arg0: i32, %arg1: memref<64x128xf32, #tpu.memory_space<vmem>>, %arg2: memref<64x128xf32, #tpu.memory_space<vmem>>, %arg3: memref<2x64x128xf32, #tpu.memory_space<vmem>>, %arg4: memref<64x1xf32, #tpu.memory_space<vmem>>) attributes {dimension_semantics = [#tpu.dimension_semantics<parallel>], iteration_bounds = array<i64: 1>, scalar_prefetch = 0 : i64, scratch_operands = 0 : i64, tpu.core_type = #tpu.core_type<tc>, window_params = [{transform_indices = @transform_0, window_bounds = array<i64: 64, 128>}, {transform_indices = @transform_1, window_bounds = array<i64: 64, 128>}, {transform_indices = @transform_2, window_bounds = array<i64: 2, 64, 128>}, {transform_indices = @transform_3, window_bounds = array<i64: 64, 1>}]} {
    %c0 = arith.constant 0 : index
    %c0_0 = arith.constant 0 : index
    %0 = vector.load %arg1[%c0, %c0_0] : memref<64x128xf32, #tpu.memory_space<vmem>>, vector<64x128xf32>
    %c0_1 = arith.constant 0 : index
    %c0_2 = arith.constant 0 : index
    %1 = vector.load %arg2[%c0_1, %c0_2] : memref<64x128xf32, #tpu.memory_space<vmem>>, vector<64x128xf32>
    %2 = arith.mulf %0, %0 : vector<64x128xf32>
    %cst = arith.constant dense<0.000000e+00> : vector<64xf32>
    %3 = vector.multi_reduction <add>, %2, %cst [1] : vector<64x128xf32> to vector<64xf32>
    %4 = vector.shape_cast %3 : vector<64xf32> to vector<64x1xf32>
    %5 = math.rsqrt %4 : vector<64x1xf32>
    %6 = vector.broadcast %5 : vector<64x1xf32> to vector<64x128xf32>
    %7 = arith.mulf %0, %6 : vector<64x128xf32>
    %8 = arith.mulf %1, %1 : vector<64x128xf32>
    %cst_3 = arith.constant dense<0.000000e+00> : vector<64xf32>
    %9 = vector.multi_reduction <add>, %8, %cst_3 [1] : vector<64x128xf32> to vector<64xf32>
    %10 = vector.shape_cast %9 : vector<64xf32> to vector<64x1xf32>
    %11 = math.rsqrt %10 : vector<64x1xf32>
    %12 = vector.broadcast %11 : vector<64x1xf32> to vector<64x128xf32>
    %13 = arith.mulf %1, %12 : vector<64x128xf32>
    %c0_4 = arith.constant 0 : index
    %c0_5 = arith.constant 0 : index
    %c0_6 = arith.constant 0 : index
    %14 = vector.load %arg3[%c0_4, %c0_5, %c0_6] : memref<2x64x128xf32, #tpu.memory_space<vmem>>, vector<1x64x128xf32>
    %15 = vector.shape_cast %14 : vector<1x64x128xf32> to vector<64x128xf32>
    %16 = vector.shape_cast %7 : vector<64x128xf32> to vector<1x64x128xf32>
    tpu.vector_store %arg3[%c0_4, %c0_5, %c0_6], %16 {strides = array<i32>} : memref<2x64x128xf32, #tpu.memory_space<vmem>>, vector<1x64x128xf32>,
    %c1 = arith.constant 1 : index
    %c0_7 = arith.constant 0 : index
    %c0_8 = arith.constant 0 : index
    %17 = vector.load %arg3[%c1, %c0_7, %c0_8] : memref<2x64x128xf32, #tpu.memory_space<vmem>>, vector<1x64x128xf32>
    %18 = vector.shape_cast %17 : vector<1x64x128xf32> to vector<64x128xf32>
    %19 = vector.shape_cast %13 : vector<64x128xf32> to vector<1x64x128xf32>
    tpu.vector_store %arg3[%c1, %c0_7, %c0_8], %19 {strides = array<i32>} : memref<2x64x128xf32, #tpu.memory_space<vmem>>, vector<1x64x128xf32>,
    %20 = arith.mulf %7, %13 : vector<64x128xf32>
    %cst_9 = arith.constant dense<0.000000e+00> : vector<64xf32>
    %21 = vector.multi_reduction <add>, %20, %cst_9 [1] : vector<64x128xf32> to vector<64xf32>
    %22 = vector.shape_cast %21 : vector<64xf32> to vector<64x1xf32>
    %cst_10 = arith.constant 2.000000e+00 : f32
    %23 = vector.broadcast %cst_10 : f32 to vector<64x1xf32>
    %24 = arith.mulf %22, %23 : vector<64x1xf32>
    %c0_11 = arith.constant 0 : index
    %c0_12 = arith.constant 0 : index
    %25 = vector.load %arg4[%c0_11, %c0_12] : memref<64x1xf32, #tpu.memory_space<vmem>>, vector<64x1xf32>
    tpu.vector_store %arg4[%c0_11, %c0_12], %24 {strides = array<i32>} : memref<64x1xf32, #tpu.memory_space<vmem>>, vector<64x1xf32>,
    return
  }
  func.func @transform_0(%arg0: i32) -> (i32, i32) {
    %c0_i32 = arith.constant 0 : i32
    %c0_i32_0 = arith.constant 0 : i32
    return %arg0, %c0_i32 : i32, i32
  }
  func.func @transform_1(%arg0: i32) -> (i32, i32) {
    %c0_i32 = arith.constant 0 : i32
    %c0_i32_0 = arith.constant 0 : i32
    return %arg0, %c0_i32 : i32, i32
  }
  func.func @transform_2(%arg0: i32) -> (i32, i32, i32) {
    %c0_i32 = arith.constant 0 : i32
    %c0_i32_0 = arith.constant 0 : i32
    %c0_i32_1 = arith.constant 0 : i32
    return %c0_i32, %arg0, %c0_i32_0 : i32, i32, i32
  }
  func.func @transform_3(%arg0: i32) -> (i32, i32) {
    %c0_i32 = arith.constant 0 : i32
    %c0_i32_0 = arith.constant 0 : i32
    return %arg0, %c0_i32 : i32, i32
  }
}

</mosaic_0001>

<bundles_post_ra>
// kernel: tpu_custom_call.1
= control target key start
LH: loop header
LB: loop body
LE: loop exit
PB: predicated region body
PF: predicated region fallthrough
CT: control target
= control target key end

     0   :  { %9 = vsyncpa [#allocation3], 0  ;;  %s509_s0 = inlined_call_operand.hbm [shape: f32[64,128], index: 0, kind: input, shape index: {}]   ;;  %s510_s1 = inlined_call_operand.hbm [shape: f32[64,128], index: 1, kind: input, shape index: {}]   ;;  %s511_s2 = inlined_call_operand.hbm [shape: f32[2,64,128], index: 2, kind: output, shape index: {0}]   ;;  %s512_s3 = inlined_call_operand.vmem [shape: f32[64,1], index: 3, kind: output, shape index: {1}]  }
   0x1   :  { %10 = vsyncpa [#allocation6], 0 }
   0x2   :  { %11 = vsyncpa [#allocation4], 0  ;;  %s327_s12 = smov [#allocation2]   ;;  %s255_s16 = scalar_lea.hbm %s509_s0, 1024 }
   0x3   :  { %s17_s13 = sshll.u32 %s327_s12, 4  ;;  %p256_p0 = scmp.ne.s32.totalorder %s509_s0, %s255_s16  ;;  %s18_s13 = int_to_ptr.vmem [resolvable:$true] %s17_s13 }
   0x4   :  { %p259_p1 = scmp.lt.u32.totalorder %s255_s16, %s509_s0 }
   0x6   :  { %p261_p2 = pnand %p259_p1, %p256_p0 }
   0x8   :  { %264 = shalt.err (!%p261_p2)
}
   0x9   :  { %s265_s21 = scalar_lea.vmem %s18_s13, 1024  ;;  %p270_p4 = scmp.lt.s32.totalorder %s18_s13, %s18_s13 }
   0xa   :  { %p266_p3 = scmp.ne.s32.totalorder %s18_s13, %s265_s21  ;;  %p271_p5 = scmp.lt.s32.totalorder %s265_s21, %s265_s21 }
   0xc   :  { %p272_p6 = por %p271_p5, %p270_p4 }
   0xe   :  { %p273_p7 = pnand %p272_p6, %p266_p3 }
  0x10   :  { %276 = shalt.err (!%p273_p7)
}
  0x11   :  { %s328_s22 = smov 128   ;;  %s329_s23 = smov 8  }
  0x12   :  { %23 = dma.hbm_to_vmem [thread:$0]  %s509_s0, 1024, %s18_s13, [#allocation3], %s328_s22, %s328_s22, %s329_s23  }
  0x13   :  { %s330_s26 = smov [#allocation5]   ;;  %s277_s30 = scalar_lea.hbm %s510_s1, 1024 }
  0x14   :  { %s29_s27 = sshll.u32 %s330_s26, 4  ;;  %p278_p8 = scmp.ne.s32.totalorder %s510_s1, %s277_s30  ;;  %s30_s27 = int_to_ptr.vmem [resolvable:$true] %s29_s27 }
  0x15   :  { %p281_p9 = scmp.lt.u32.totalorder %s277_s30, %s510_s1 }
  0x17   :  { %p283_p10 = pnand %p281_p9, %p278_p8 }
  0x19   :  { %286 = shalt.err (!%p283_p10)
}
  0x1a   :  { %s287_s8 = scalar_lea.vmem %s30_s27, 1024  ;;  %p292_p12 = scmp.lt.s32.totalorder %s30_s27, %s30_s27 }
  0x1b   :  { %p288_p11 = scmp.ne.s32.totalorder %s30_s27, %s287_s8  ;;  %p293_p13 = scmp.lt.s32.totalorder %s287_s8, %s287_s8 }
  0x1d   :  { %p294_p0 = por %p293_p13, %p292_p12 }
  0x1f   :  { %p295_p1 = pnand %p294_p0, %p288_p11 }
  0x21   :  { %298 = shalt.err (!%p295_p1)
}
  0x22   :  { %35 = dma.hbm_to_vmem [thread:$0]  %s510_s1, 1024, %s30_s27, [#allocation6], %s328_s22, %s328_s22, %s329_s23  }
  0x23   :  { %321 = dma.done.wait [#allocation3], 1024  }
  0x24   :  { %322 = vsyncadd [#allocation3], 4294966272 }
  0x25   :  { %323 = dma.done.wait [#allocation6], 1024  }
  0x26   :  { %324 = vsyncadd [#allocation6], 4294966272  ;;  %v382_v0 = vld [vmem:[#allocation2 + $0x10] sm:$0xff]  ;;  %v384_v1 = vld [vmem:[#allocation2] sm:$0xff]  ;;  %s331_s1 = smov [#allocation7]  }
  0x27   :  { %v386_v2 = vld [vmem:[#allocation2 + $0x18] sm:$0xff]  ;;  %v60_v3 = vmul.f32 %v382_v0, %v382_v0  ;;  %v58_v4 = vmul.f32 %v384_v1, %v384_v1  ;;  %v392_v5 = vld [vmem:[#allocation2 + $0x8] sm:$0xff]  ;;  %v400_v9 = vld [vmem:[#allocation2 + $0x20] sm:$0xff]  ;;  %s201_s10 = sshll.u32 %s331_s1, 4  ;;  %s202_s10 = int_to_ptr.vmem [resolvable:$true] %s201_s10 }
  0x28   :  { %v61_v6 = vmul.f32 %v386_v2, %v386_v2  ;;  %v59_v7 = vmul.f32 %v392_v5, %v392_v5  ;;  %v398_v8 = vld [vmem:[#allocation2 + $0x28] sm:$0xff]  ;;  %v62_v11 = vmul.f32 %v400_v9, %v400_v9  ;;  %v406_v12 = vld [vmem:[#allocation2 + $0x38] sm:$0xff]  ;;  %v408_v13 = vld [vmem:[#allocation2 + $0x30] sm:$0xff]  ;;  %s299_s11 = scalar_lea.vmem %s202_s10, 2048  ;;  %p304_p3 = scmp.lt.s32.totalorder %s202_s10, %s202_s10 }
  0x29   :  { %70 = vadd.xlane.f32.xlu1 %v60_v3  ;;  %66 = vadd.xlane.f32.xlu0 %v58_v4  ;;  %v63_v10 = vmul.f32 %v398_v8, %v398_v8  ;;  %v65_v14 = vmul.f32 %v406_v12, %v406_v12  ;;  %v64_v15 = vmul.f32 %v408_v13, %v408_v13  ;;  %v414_v16 = vld [vmem:[#allocation5 + $0x8] sm:$0xff]  ;;  %v416_v17 = vld [vmem:[#allocation5] sm:$0xff]  ;;  %v422_v20 = vld [vmem:[#allocation5 + $0x18] sm:$0xff]  ;;  %p300_p2 = scmp.ne.s32.totalorder %s202_s10, %s299_s11  ;;  %p305_p4 = scmp.lt.s32.totalorder %s299_s11, %s299_s11 }
  0x2a   :  { %v99_v18 = vmul.f32 %v414_v16, %v414_v16  ;;  %v98_v19 = vmul.f32 %v416_v17, %v416_v17  ;;  %v424_v21 = vld [vmem:[#allocation5 + $0x10] sm:$0xff]  ;;  %v101_v22 = vmul.f32 %v422_v20, %v422_v20  ;;  %v430_v24 = vld [vmem:[#allocation5 + $0x28] sm:$0xff]  ;;  %v432_v25 = vld [vmem:[#allocation5 + $0x20] sm:$0xff] }
  0x2b   :  { %v100_v23 = vmul.f32 %v424_v21, %v424_v21  ;;  %v103_v26 = vmul.f32 %v430_v24, %v430_v24  ;;  %v102_v27 = vmul.f32 %v432_v25, %v432_v25  ;;  %v438_v28 = vld [vmem:[#allocation5 + $0x38] sm:$0xff]  ;;  %v440_v29 = vld [vmem:[#allocation5 + $0x30] sm:$0xff]  ;;  %p306_p5 = por %p305_p4, %p304_p3 }
  0x2c   :  { %v105_v30 = vmul.f32 %v438_v28, %v438_v28  ;;  %v104_v31 = vmul.f32 %v440_v29, %v440_v29 }
  0x2d   :  { %72 = vadd.xlane.f32.xlu1 %v61_v6  ;;  %68 = vadd.xlane.f32.xlu0 %v59_v7  ;;  %p307_p6 = pnand %p306_p5, %p300_p2 }
  0x31   :  { %76 = vadd.xlane.f32.xlu1 %v63_v10  ;;  %74 = vadd.xlane.f32.xlu0 %v62_v11 }
  0x35   :  { %80 = vadd.xlane.f32.xlu1 %v65_v14  ;;  %78 = vadd.xlane.f32.xlu0 %v64_v15 }
  0x39   :  { %108 = vadd.xlane.f32.xlu1 %v99_v18  ;;  %106 = vadd.xlane.f32.xlu0 %v98_v19 }
  0x3d   :  { %112 = vadd.xlane.f32.xlu1 %v101_v22  ;;  %110 = vadd.xlane.f32.xlu0 %v100_v23 }
  0x41   :  { %116 = vadd.xlane.f32.xlu1 %v103_v26  ;;  %114 = vadd.xlane.f32.xlu0 %v102_v27 }
  0x45   :  { %120 = vadd.xlane.f32.xlu1 %v105_v30  ;;  %118 = vadd.xlane.f32.xlu0 %v104_v31 }
  0xb6   :  { %v71_v32 = vpop.xlane.xlu1 %70  ;;  %v67_v33 = vpop.xlane.xlu0 %66 }
  0xb7   :  { %223 = vrsqrt.f32 %v71_v32 }
  0xb8   :  { %225 = vrsqrt.f32 %v67_v33 }
  0xba   :  { %v73_v34 = vpop.xlane.xlu1 %72  ;;  %v69_v35 = vpop.xlane.xlu0 %68 }
  0xbb   :  { %227 = vrsqrt.f32 %v73_v34 }
  0xbc   :  { %229 = vrsqrt.f32 %v69_v35 }
  0xbe   :  { %v77_v36 = vpop.xlane.xlu1 %76  ;;  %v75_v37 = vpop.xlane.xlu0 %74 }
  0xbf   :  { %231 = vrsqrt.f32 %v77_v36 }
  0xc0   :  { %233 = vrsqrt.f32 %v75_v37 }
  0xc1   :  { %v224_v38 = vpop.eup %223 }
  0xc2   :  { %v226_v39 = vpop.eup %225  ;;  %v81_v40 = vpop.xlane.xlu1 %80  ;;  %v92_v42 = vmul.f32 %v224_v38, %v382_v0 }
  0xc3   :  { %v79_v41 = vpop.xlane.xlu0 %78  ;;  %235 = vrsqrt.f32 %v81_v40  ;;  %v90_v43 = vmul.f32 %v226_v39, %v384_v1 }
  0xc4   :  { %237 = vrsqrt.f32 %v79_v41  ;;  %140 = vst [vmem:[#allocation7 + $0x10] sm:$0xff] %v92_v42 }
  0xc5   :  { %v228_v44 = vpop.eup %227  ;;  %138 = vst [vmem:[#allocation7] sm:$0xff] %v90_v43 }
  0xc6   :  { %v230_v45 = vpop.eup %229  ;;  %v109_v46 = vpop.xlane.xlu1 %108  ;;  %v93_v48 = vmul.f32 %v228_v44, %v386_v2 }
  0xc7   :  { %v107_v47 = vpop.xlane.xlu0 %106  ;;  %239 = vrsqrt.f32 %v109_v46  ;;  %v91_v49 = vmul.f32 %v230_v45, %v392_v5 }
  0xc8   :  { %241 = vrsqrt.f32 %v107_v47  ;;  %141 = vst [vmem:[#allocation7 + $0x18] sm:$0xff] %v93_v48 }
  0xc9   :  { %v232_v50 = vpop.eup %231  ;;  %139 = vst [vmem:[#allocation7 + $0x8] sm:$0xff] %v91_v49 }
  0xca   :  { %v234_v51 = vpop.eup %233  ;;  %v113_v52 = vpop.xlane.xlu1 %112  ;;  %v95_v54 = vmul.f32 %v232_v50, %v398_v8 }
  0xcb   :  { %v111_v53 = vpop.xlane.xlu0 %110  ;;  %243 = vrsqrt.f32 %v113_v52  ;;  %v94_v55 = vmul.f32 %v234_v51, %v400_v9 }
  0xcc   :  { %245 = vrsqrt.f32 %v111_v53  ;;  %143 = vst [vmem:[#allocation7 + $0x28] sm:$0xff] %v95_v54 }
  0xcd   :  { %v236_v56 = vpop.eup %235  ;;  %142 = vst [vmem:[#allocation7 + $0x20] sm:$0xff] %v94_v55 }
  0xce   :  { %v238_v57 = vpop.eup %237  ;;  %v117_v58 = vpop.xlane.xlu1 %116  ;;  %v97_v60 = vmul.f32 %v236_v56, %v406_v12 }
  0xcf   :  { %v115_v59 = vpop.xlane.xlu0 %114  ;;  %247 = vrsqrt.f32 %v117_v58  ;;  %v96_v61 = vmul.f32 %v238_v57, %v408_v13 }
  0xd0   :  { %249 = vrsqrt.f32 %v115_v59  ;;  %145 = vst [vmem:[#allocation7 + $0x38] sm:$0xff] %v97_v60 }
  0xd1   :  { %v240_v62 = vpop.eup %239  ;;  %144 = vst [vmem:[#allocation7 + $0x30] sm:$0xff] %v96_v61 }
  0xd2   :  { %v242_v63 = vpop.eup %241  ;;  %v121_v0 = vpop.xlane.xlu1 %120  ;;  %v131_v2 = vmul.f32 %v240_v62, %v414_v16 }
  0xd3   :  { %v119_v1 = vpop.xlane.xlu0 %118  ;;  %251 = vrsqrt.f32 %v121_v0  ;;  %v130_v3 = vmul.f32 %v242_v63, %v416_v17 }
  0xd4   :  { %253 = vrsqrt.f32 %v119_v1  ;;  %148 = vst [vmem:[#allocation7 + $0x48] sm:$0xff] %v131_v2  ;;  %v156_v4 = vmul.f32 %v131_v2, %v91_v49 }
  0xd5   :  { %v244_v5 = vpop.eup %243  ;;  %v155_v6 = vmul.f32 %v130_v3, %v90_v43  ;;  %147 = vst [vmem:[#allocation7 + $0x40] sm:$0xff] %v130_v3 }
  0xd6   :  { %v246_v7 = vpop.eup %245  ;;  %165 = vadd.xlane.f32.xlu1 %v156_v4  ;;  %v133_v8 = vmul.f32 %v244_v5, %v422_v20 }
  0xd7   :  { %163 = vadd.xlane.f32.xlu0 %v155_v6  ;;  %v132_v9 = vmul.f32 %v246_v7, %v424_v21 }
  0xd8   :  { %150 = vst [vmem:[#allocation7 + $0x58] sm:$0xff] %v133_v8  ;;  %v158_v10 = vmul.f32 %v133_v8, %v93_v48 }
  0xd9   :  { %v248_v11 = vpop.eup %247  ;;  %v157_v12 = vmul.f32 %v132_v9, %v92_v42  ;;  %149 = vst [vmem:[#allocation7 + $0x50] sm:$0xff] %v132_v9 }
  0xda   :  { %v250_v13 = vpop.eup %249  ;;  %169 = vadd.xlane.f32.xlu1 %v158_v10  ;;  %v135_v14 = vmul.f32 %v248_v11, %v430_v24 }
  0xdb   :  { %167 = vadd.xlane.f32.xlu0 %v157_v12  ;;  %v134_v15 = vmul.f32 %v250_v13, %v432_v25 }
  0xdc   :  { %152 = vst [vmem:[#allocation7 + $0x68] sm:$0xff] %v135_v14  ;;  %v160_v16 = vmul.f32 %v135_v14, %v95_v54 }
  0xdd   :  { %v252_v17 = vpop.eup %251  ;;  %v159_v18 = vmul.f32 %v134_v15, %v94_v55  ;;  %151 = vst [vmem:[#allocation7 + $0x60] sm:$0xff] %v134_v15 }
  0xde   :  { %v254_v19 = vpop.eup %253  ;;  %173 = vadd.xlane.f32.xlu1 %v160_v16  ;;  %v137_v20 = vmul.f32 %v252_v17, %v438_v28 }
  0xdf   :  { %171 = vadd.xlane.f32.xlu0 %v159_v18  ;;  %v136_v21 = vmul.f32 %v254_v19, %v440_v29 }
  0xe0   :  { %154 = vst [vmem:[#allocation7 + $0x78] sm:$0xff] %v137_v20  ;;  %v162_v22 = vmul.f32 %v137_v20, %v97_v60 }
  0xe1   :  { %v161_v23 = vmul.f32 %v136_v21, %v96_v61  ;;  %153 = vst [vmem:[#allocation7 + $0x70] sm:$0xff] %v136_v21 }
  0xe2   :  { %177 = vadd.xlane.f32.xlu1 %v162_v22 }
  0xe3   :  { %175 = vadd.xlane.f32.xlu0 %v161_v23 }
  0xe4   :  { %310 = shalt.err (!%p307_p6)
}
  0xe5   :  { %s311_s14 = scalar_lea.hbm %s511_s2, 2048 }
  0xe6   :  { %p312_p7 = scmp.ne.s32.totalorder %s511_s2, %s311_s14  ;;  %p315_p8 = scmp.lt.u32.totalorder %s311_s14, %s511_s2 }
  0xe8   :  { %p317_p9 = pnand %p315_p8, %p312_p7 }
  0xea   :  { %320 = shalt.err (!%p317_p9)
}
  0xeb   :  { %207 = dma.vmem_to_hbm [thread:$0]  %s202_s10, 2048, %s511_s2, [#allocation4], %s328_s22, %s328_s22, %s329_s23   ;;  %vm187_vm0 = vcmask 7168  }
 0x163   :  { %v166_v24 = vpop.xlane.xlu1 %165 }
 0x164   :  { %v180_v25 = vmul.f32 2.0, %v166_v24  ;;  %v164_v26 = vpop.xlane.xlu0 %163 }
 0x165   :  { %v179_v27 = vmul.f32 2.0, %v164_v26 }
 0x166   :  { %189 = vst.msk [vmem:[%s512_s3 + $0x8] sm:$0xff] %vm187_vm0, %v180_v25 }
 0x167   :  { %188 = vst.msk [vmem:[%s512_s3] sm:$0xff] %vm187_vm0, %v179_v27  ;;  %v170_v28 = vpop.xlane.xlu1 %169 }
 0x168   :  { %v182_v29 = vmul.f32 2.0, %v170_v28  ;;  %v168_v30 = vpop.xlane.xlu0 %167 }
 0x169   :  { %v181_v31 = vmul.f32 2.0, %v168_v30 }
 0x16a   :  { %191 = vst.msk [vmem:[%s512_s3 + $0x18] sm:$0xff] %vm187_vm0, %v182_v29 }
 0x16b   :  { %190 = vst.msk [vmem:[%s512_s3 + $0x10] sm:$0xff] %vm187_vm0, %v181_v31  ;;  %v174_v32 = vpop.xlane.xlu1 %173 }
 0x16c   :  { %v184_v33 = vmul.f32 2.0, %v174_v32  ;;  %v172_v34 = vpop.xlane.xlu0 %171 }
 0x16d   :  { %v183_v35 = vmul.f32 2.0, %v172_v34 }
 0x16e   :  { %193 = vst.msk [vmem:[%s512_s3 + $0x28] sm:$0xff] %vm187_vm0, %v184_v33 }
 0x16f   :  { %192 = vst.msk [vmem:[%s512_s3 + $0x20] sm:$0xff] %vm187_vm0, %v183_v35  ;;  %v178_v36 = vpop.xlane.xlu1 %177 }
 0x170   :  { %v186_v37 = vmul.f32 2.0, %v178_v36  ;;  %v176_v38 = vpop.xlane.xlu0 %175 }
 0x171   :  { %v185_v39 = vmul.f32 2.0, %v176_v38 }
 0x172   :  { %195 = vst.msk [vmem:[%s512_s3 + $0x38] sm:$0xff] %vm187_vm0, %v186_v37 }
 0x173   :  { %194 = vst.msk [vmem:[%s512_s3 + $0x30] sm:$0xff] %vm187_vm0, %v185_v39 }
 0x174   :  { %325 = dma.done.wait [#allocation4], 2048  }
 0x175   :  { %326 = vsyncadd [#allocation4], 4294965248 }
 0x176   :  { %215 = vsyncpa [#allocation3], 1 }
 0x177   :  { %216 = vsyncpa [#allocation6], 1 }
 0x178   :  { %217 = vsyncpa [#allocation4], 1 }

</bundles_post_ra>
